<compile_context>
chip_gen: v7x
topology: tpu7x:2x2x1
jax: 0.10.0
libtpu: 0.0.40
codegen_flags: <defaults>
</compile_context>

<pallas_src>
import jax
import jax.numpy as jnp
from jax.experimental import pallas as pl
from jax.experimental.pallas import tpu as pltpu


def _round_up(n, m):
    return ((n + m - 1) // m) * m


def _cdiv(a, b):
    return -(-a // b)


def _batch_tile_cap():
    """Per-generation batch-tile cap: 256 on v5e, 512 elsewhere (v6e/v7x)."""
    try:
        kind = jax.devices()[0].device_kind.lower()
    except Exception:
        return 512
    if "v5 lite" in kind or "v5e" in kind or "v5lite" in kind:
        return 256
    return 512


def _noisy_dqn_kernel(x_ref, w1_ref, b1_ref, w2_ref, b2_ref, w3_ref, b3_ref,
                      out_ref):
    # x arrives f32; cast to bf16 in-kernel (avoids a separate wrapper-side
    # HBM pass over the whole batch).
    x = x_ref[...].astype(jnp.bfloat16)

    # layer 1: Linear + ReLU  (bf16 x bf16 -> f32 accumulate on the MXU)
    h1 = jnp.dot(x, w1_ref[...],
                 preferred_element_type=jnp.float32) + b1_ref[...]
    h1 = jnp.maximum(h1, 0.0)

    # layer 2: Linear + ReLU
    h2 = jnp.dot(h1.astype(jnp.bfloat16), w2_ref[...],
                 preferred_element_type=jnp.float32) + b2_ref[...]
    h2 = jnp.maximum(h2, 0.0)

    # layer 3: NoisyLinear (noise already fused into w3/b3 by the wrapper)
    q = jnp.dot(h2.astype(jnp.bfloat16), w3_ref[...],
                preferred_element_type=jnp.float32) + b3_ref[...]

    out_ref[...] = q.astype(out_ref.dtype)


def prepare_params(params):
    """Fuse factorised noise (f32), zero-pad to lane multiples, cast to bf16."""
    (w1, b1, w2, b2, wmu, wsig, weps, bmu, bsig, beps) = params
    in_f, h1 = w1.shape
    h2 = w2.shape[1]
    a = wmu.shape[1]

    # Training-mode noisy weight/bias, combined in f32 outside the kernel.
    w3 = wmu + wsig * weps
    b3 = bmu + bsig * beps

    h1p = _round_up(h1, 128)
    h2p = _round_up(h2, 128)
    ap = _round_up(a, 128)

    def pad2(w, rows, cols):
        return jnp.pad(w, ((0, rows - w.shape[0]), (0, cols - w.shape[1])))

    w1p = pad2(w1, in_f, h1p).astype(jnp.bfloat16)
    w2p = pad2(w2, h1p, h2p).astype(jnp.bfloat16)
    w3p = pad2(w3, h2p, ap).astype(jnp.bfloat16)
    b1p = jnp.pad(b1, (0, h1p - h1)).reshape(1, h1p).astype(jnp.float32)
    b2p = jnp.pad(b2, (0, h2p - h2)).reshape(1, h2p).astype(jnp.float32)
    b3p = jnp.pad(b3, (0, ap - a)).reshape(1, ap).astype(jnp.float32)
    return (w1p, b1p, w2p, b2p, w3p, b3p)


def noisy_dqn_forward(x, prepared, action_dim):
    """x: [B, in_features] f32 -> q: [B, action_dim] f32."""
    (w1p, b1p, w2p, b2p, w3p, b3p) = prepared
    B, F = x.shape
    ap = w3p.shape[1]

    # Batch tiling:
    #   * small B (<= 256): one tile (launch/DMA-floor bound anyway).
    #   * large B: at least 2 grid steps so v7x's second TensorCore engages
    #     ("parallel" axis), with per-tile rows capped at 512 (256 on v5e) to
    #     amortize the ~0.35us per-step overhead over real MXU work.
    cap = _batch_tile_cap()
    if B <= 256:
        tile_b = _round_up(B, 8)
    else:
        tile_b = min(cap, _round_up(_cdiv(B, 2), 8))
    b_pad = _round_up(B, tile_b)

    # Pad the batch only when required (f32; cast to bf16 happens in-kernel).
    xp = x if b_pad == B else jnp.pad(x, ((0, b_pad - B), (0, 0)))

    def const_spec(shape):
        # Constant index_map -> operand is resident; single-buffer it.
        try:
            return pl.BlockSpec(shape, lambda i: (0,) * len(shape),
                                pipeline_mode=pl.Buffered(1))
        except TypeError:
            return pl.BlockSpec(shape, lambda i: (0,) * len(shape))

    out = pl.pallas_call(
        _noisy_dqn_kernel,
        out_shape=jax.ShapeDtypeStruct((b_pad, ap), jnp.float32),
        grid=(b_pad // tile_b,),
        in_specs=[
            pl.BlockSpec((tile_b, F), lambda i: (i, 0)),
            const_spec(w1p.shape), const_spec(b1p.shape),
            const_spec(w2p.shape), const_spec(b2p.shape),
            const_spec(w3p.shape), const_spec(b3p.shape),
        ],
        out_specs=pl.BlockSpec((tile_b, ap), lambda i: (i, 0)),
        compiler_params=pltpu.CompilerParams(
            dimension_semantics=("parallel",)),
    )(xp, w1p, b1p, w2p, b2p, w3p, b3p)

    return out[:B, :action_dim]


def _scale_noise(key, size):
    # torch: x = randn(size); x.sign() * sqrt(|x|)
    x = jax.random.normal(key, (size,), dtype=jnp.float32)
    return jnp.sign(x) * jnp.sqrt(jnp.abs(x))


def init_params(key, in_features, hidden_sizes, action_dim, std_init=0.5):
    """Logical (unpadded, f32) parameters in [in, out] layout."""
    h1, h2 = hidden_sizes
    keys = jax.random.split(key, 6)

    # Plain Linear layers (bias zero-init, matching nn.init.zeros_).
    bound1 = 1.0 / jnp.sqrt(jnp.float32(in_features))
    w1 = jax.random.uniform(keys[0], (in_features, h1), jnp.float32, -bound1, bound1)
    b1 = jnp.zeros((h1,), jnp.float32)

    bound2 = 1.0 / jnp.sqrt(jnp.float32(h1))
    w2 = jax.random.uniform(keys[1], (h1, h2), jnp.float32, -bound2, bound2)
    b2 = jnp.zeros((h2,), jnp.float32)

    # NoisyLinear parameters (stored [in, out] = transpose of PyTorch layout).
    mu_range = 1.0 / jnp.sqrt(jnp.float32(h2))
    wmu = jax.random.uniform(keys[2], (h2, action_dim), jnp.float32, -mu_range, mu_range)
    wsig = jnp.full((h2, action_dim), std_init / jnp.sqrt(jnp.float32(h2)), jnp.float32)
    bmu = jax.random.uniform(keys[3], (action_dim,), jnp.float32, -mu_range, mu_range)
    bsig = jnp.full((action_dim,), std_init / jnp.sqrt(jnp.float32(action_dim)), jnp.float32)

    # Factorised noise: eps_w = outer(eps_out, eps_in) -> transposed to [in, out]
    eps_in = _scale_noise(keys[4], h2)
    eps_out = _scale_noise(keys[5], action_dim)
    weps = jnp.outer(eps_in, eps_out)          # [h2, A] == outer(out, in).T
    beps = eps_out

    return (w1, b1, w2, b2, wmu, wsig, weps, bmu, bsig, beps)


def reference_forward(x, params):
    """Pure-JAX reference mirroring the kernel's bf16-in / f32-accumulate math."""
    (w1, b1, w2, b2, wmu, wsig, weps, bmu, bsig, beps) = params
    w3 = wmu + wsig * weps
    b3 = bmu + bsig * beps
    bf = jnp.bfloat16
    h1 = jnp.maximum(jnp.dot(x.astype(bf), w1.astype(bf),
                             preferred_element_type=jnp.float32) + b1, 0.0)
    h2 = jnp.maximum(jnp.dot(h1.astype(bf), w2.astype(bf),
                             preferred_element_type=jnp.float32) + b2, 0.0)
    return jnp.dot(h2.astype(bf), w3.astype(bf),
                   preferred_element_type=jnp.float32) + b3


if __name__ == "__main__":
    key = jax.random.PRNGKey(0)
    k_x, k_x2, k_p = jax.random.split(key, 3)

    in_features = 32
    hidden_sizes = (400, 300)   # NoisyDQNetwork defaults
    action_dim = 6

    params = init_params(k_p, in_features, hidden_sizes, action_dim)
    prepared = prepare_params(params)

    # Small batch: single grid step (launch-overhead-floor case).
    x_small = jax.random.normal(k_x, (8, in_features), jnp.float32)
    q_small = jax.block_until_ready(noisy_dqn_forward(x_small, prepared, action_dim))
    ref_small = reference_forward(x_small, params)
    assert q_small.shape == (8, action_dim)
    assert jnp.allclose(q_small, ref_small, atol=1e-3, rtol=1e-3), \
        float(jnp.max(jnp.abs(q_small - ref_small)))

    # Larger batch: exercises the multi-tile path (>= 2 parallel grid steps,
    # batch padding, resident single-buffered weights).
    x_big = jax.random.normal(k_x2, (300, in_features), jnp.float32)
    q_big = jax.block_until_ready(noisy_dqn_forward(x_big, prepared, action_dim))
    ref_big = reference_forward(x_big, params)
    assert q_big.shape == (300, action_dim)
    assert jnp.allclose(q_big, ref_big, atol=1e-3, rtol=1e-3), \
        float(jnp.max(jnp.abs(q_big - ref_big)))

    print("KERNEL_OK")
</pallas_src>

<mosaic_0001>
module attributes {stable_mosaic.version = 11 : i64} {
  func.func @_noisy_dqn_kernel(%arg0: i32, %arg1: memref<8x32xf32, #tpu.memory_space<vmem>>, %arg2: memref<32x512xbf16, #tpu.memory_space<vmem>>, %arg3: memref<1x512xf32, #tpu.memory_space<vmem>>, %arg4: memref<512x384xbf16, #tpu.memory_space<vmem>>, %arg5: memref<1x384xf32, #tpu.memory_space<vmem>>, %arg6: memref<384x128xbf16, #tpu.memory_space<vmem>>, %arg7: memref<1x128xf32, #tpu.memory_space<vmem>>, %arg8: memref<8x128xf32, #tpu.memory_space<vmem>>) attributes {dimension_semantics = [#tpu.dimension_semantics<parallel>], iteration_bounds = array<i64: 1>, scalar_prefetch = 0 : i64, scratch_operands = 0 : i64, tpu.core_type = #tpu.core_type<tc>, window_params = [{transform_indices = @transform_0, window_bounds = array<i64: 8, 32>}, {pipeline_mode = #tpu.pipeline_mode<synchronous>, transform_indices = @transform_1, window_bounds = array<i64: 32, 512>}, {pipeline_mode = #tpu.pipeline_mode<synchronous>, transform_indices = @transform_2, window_bounds = array<i64: 1, 512>}, {pipeline_mode = #tpu.pipeline_mode<synchronous>, transform_indices = @transform_3, window_bounds = array<i64: 512, 384>}, {pipeline_mode = #tpu.pipeline_mode<synchronous>, transform_indices = @transform_4, window_bounds = array<i64: 1, 384>}, {pipeline_mode = #tpu.pipeline_mode<synchronous>, transform_indices = @transform_5, window_bounds = array<i64: 384, 128>}, {pipeline_mode = #tpu.pipeline_mode<synchronous>, transform_indices = @transform_6, window_bounds = array<i64: 1, 128>}, {transform_indices = @transform_7, window_bounds = array<i64: 8, 128>}]} {
    %c0 = arith.constant 0 : index
    %c0_0 = arith.constant 0 : index
    %0 = vector.load %arg1[%c0, %c0_0] : memref<8x32xf32, #tpu.memory_space<vmem>>, vector<8x32xf32>
    %1 = arith.truncf %0 : vector<8x32xf32> to vector<8x32xbf16>
    %c0_1 = arith.constant 0 : index
    %c0_2 = arith.constant 0 : index
    %2 = vector.load %arg2[%c0_1, %c0_2] : memref<32x512xbf16, #tpu.memory_space<vmem>>, vector<32x512xbf16>
    %cst = arith.constant dense<0.000000e+00> : vector<8x512xf32>
    %3 = tpu.matmul %1, %2, %cst {dimension_numbers = #tpu.dot_dimension_numbers<[1], [0], [0], [1], [0, 0, 1, 1], [], []>} : vector<8x32xbf16>, vector<32x512xbf16>, vector<8x512xf32> -> vector<8x512xf32>
    %c0_3 = arith.constant 0 : index
    %c0_4 = arith.constant 0 : index
    %4 = vector.load %arg3[%c0_3, %c0_4] : memref<1x512xf32, #tpu.memory_space<vmem>>, vector<1x512xf32>
    %5 = vector.broadcast %4 : vector<1x512xf32> to vector<8x512xf32>
    %6 = arith.addf %3, %5 : vector<8x512xf32>
    %cst_5 = arith.constant 0.000000e+00 : f32
    %7 = vector.broadcast %cst_5 : f32 to vector<8x512xf32>
    %8 = arith.maximumf %6, %7 : vector<8x512xf32>
    %9 = arith.truncf %8 : vector<8x512xf32> to vector<8x512xbf16>
    %c0_6 = arith.constant 0 : index
    %c0_7 = arith.constant 0 : index
    %10 = vector.load %arg4[%c0_6, %c0_7] : memref<512x384xbf16, #tpu.memory_space<vmem>>, vector<512x384xbf16>
    %cst_8 = arith.constant dense<0.000000e+00> : vector<8x384xf32>
    %11 = tpu.matmul %9, %10, %cst_8 {dimension_numbers = #tpu.dot_dimension_numbers<[1], [0], [0], [1], [0, 0, 1, 1], [], []>} : vector<8x512xbf16>, vector<512x384xbf16>, vector<8x384xf32> -> vector<8x384xf32>
    %c0_9 = arith.constant 0 : index
    %c0_10 = arith.constant 0 : index
    %12 = vector.load %arg5[%c0_9, %c0_10] : memref<1x384xf32, #tpu.memory_space<vmem>>, vector<1x384xf32>
    %13 = vector.broadcast %12 : vector<1x384xf32> to vector<8x384xf32>
    %14 = arith.addf %11, %13 : vector<8x384xf32>
    %cst_11 = arith.constant 0.000000e+00 : f32
    %15 = vector.broadcast %cst_11 : f32 to vector<8x384xf32>
    %16 = arith.maximumf %14, %15 : vector<8x384xf32>
    %17 = arith.truncf %16 : vector<8x384xf32> to vector<8x384xbf16>
    %c0_12 = arith.constant 0 : index
    %c0_13 = arith.constant 0 : index
    %18 = vector.load %arg6[%c0_12, %c0_13] : memref<384x128xbf16, #tpu.memory_space<vmem>>, vector<384x128xbf16>
    %cst_14 = arith.constant dense<0.000000e+00> : vector<8x128xf32>
    %19 = tpu.matmul %17, %18, %cst_14 {dimension_numbers = #tpu.dot_dimension_numbers<[1], [0], [0], [1], [0, 0, 1, 1], [], []>} : vector<8x384xbf16>, vector<384x128xbf16>, vector<8x128xf32> -> vector<8x128xf32>
    %c0_15 = arith.constant 0 : index
    %c0_16 = arith.constant 0 : index
    %20 = vector.load %arg7[%c0_15, %c0_16] : memref<1x128xf32, #tpu.memory_space<vmem>>, vector<1x128xf32>
    %21 = vector.broadcast %20 : vector<1x128xf32> to vector<8x128xf32>
    %22 = arith.addf %19, %21 : vector<8x128xf32>
    %c0_17 = arith.constant 0 : index
    %c0_18 = arith.constant 0 : index
    %23 = vector.load %arg8[%c0_17, %c0_18] : memref<8x128xf32, #tpu.memory_space<vmem>>, vector<8x128xf32>
    tpu.vector_store %arg8[%c0_17, %c0_18], %22 {strides = array<i32>} : memref<8x128xf32, #tpu.memory_space<vmem>>, vector<8x128xf32>,
    return
  }
  func.func @transform_0(%arg0: i32) -> (i32, i32) {
    %c0_i32 = arith.constant 0 : i32
    %c0_i32_0 = arith.constant 0 : i32
    return %arg0, %c0_i32 : i32, i32
  }
  func.func @transform_1(%arg0: i32) -> (i32, i32) {
    %c0_i32 = arith.constant 0 : i32
    %c0_i32_0 = arith.constant 0 : i32
    %c0_i32_1 = arith.constant 0 : i32
    return %c0_i32, %c0_i32_0 : i32, i32
  }
  func.func @transform_2(%arg0: i32) -> (i32, i32) {
    %c0_i32 = arith.constant 0 : i32
    %c0_i32_0 = arith.constant 0 : i32
    %c0_i32_1 = arith.constant 0 : i32
    return %c0_i32, %c0_i32_0 : i32, i32
  }
  func.func @transform_3(%arg0: i32) -> (i32, i32) {
    %c0_i32 = arith.constant 0 : i32
    %c0_i32_0 = arith.constant 0 : i32
    %c0_i32_1 = arith.constant 0 : i32
    return %c0_i32, %c0_i32_0 : i32, i32
  }
  func.func @transform_4(%arg0: i32) -> (i32, i32) {
    %c0_i32 = arith.constant 0 : i32
    %c0_i32_0 = arith.constant 0 : i32
    %c0_i32_1 = arith.constant 0 : i32
    return %c0_i32, %c0_i32_0 : i32, i32
  }
  func.func @transform_5(%arg0: i32) -> (i32, i32) {
    %c0_i32 = arith.constant 0 : i32
    %c0_i32_0 = arith.constant 0 : i32
    %c0_i32_1 = arith.constant 0 : i32
    return %c0_i32, %c0_i32_0 : i32, i32
  }
  func.func @transform_6(%arg0: i32) -> (i32, i32) {
    %c0_i32 = arith.constant 0 : i32
    %c0_i32_0 = arith.constant 0 : i32
    %c0_i32_1 = arith.constant 0 : i32
    return %c0_i32, %c0_i32_0 : i32, i32
  }
  func.func @transform_7(%arg0: i32) -> (i32, i32) {
    %c0_i32 = arith.constant 0 : i32
    %c0_i32_0 = arith.constant 0 : i32
    return %arg0, %c0_i32 : i32, i32
  }
}

</mosaic_0001>

<bundles_post_ra>
// kernel: tpu_custom_call.1
= control target key start
LH: loop header
LB: loop body
LE: loop exit
PB: predicated region body
PF: predicated region fallthrough
CT: control target
= control target key end

     0   :  { %12 = vsyncpa [#allocation3], 0  ;;  %s2044_s0 = inlined_call_operand.hbm [shape: f32[8,32], index: 0, kind: input, shape index: {}]   ;;  %s2045_s1 = inlined_call_operand.hbm [shape: bf16[32,512], index: 1, kind: input, shape index: {}]   ;;  %s2046_s2 = inlined_call_operand.vmem [shape: f32[1,512], index: 2, kind: input, shape index: {}]   ;;  %s2047_s3 = inlined_call_operand.hbm [shape: bf16[512,384], index: 3, kind: input, shape index: {}]   ;;  %s2048_s4 = inlined_call_operand.vmem [shape: f32[1,384], index: 4, kind: input, shape index: {}]   ;;  %s2049_s5 = inlined_call_operand.hbm [shape: bf16[384,128], index: 5, kind: input, shape index: {}]   ;;  %s2050_s6 = inlined_call_operand.vmem [shape: f32[1,128], index: 6, kind: input, shape index: {}]   ;;  %s2051_s7 = inlined_call_operand.hbm [shape: f32[8,128], index: 7, kind: output, shape index: {}]  }
   0x1   :  { %13 = vsyncpa [#allocation6], 0 }
   0x2   :  { %14 = vsyncpa [#allocation9], 0 }
   0x3   :  { %15 = vsyncpa [#allocation4], 0  ;;  %s1897_s24 = smov [#allocation5]   ;;  %s1779_s28 = scalar_lea.hbm %s2045_s1, 1024 }
   0x4   :  { %s31_s25 = sshll.u32 %s1897_s24, 4  ;;  %p1780_p0 = scmp.ne.s32.totalorder %s2045_s1, %s1779_s28  ;;  %s32_s25 = int_to_ptr.vmem [resolvable:$true] %s31_s25 }
   0x5   :  { %p1783_p1 = scmp.lt.u32.totalorder %s1779_s28, %s2045_s1 }
   0x7   :  { %p1785_p2 = pnand %p1783_p1, %p1780_p0 }
   0x9   :  { %1788 = shalt.err (!%p1785_p2)
}
   0xa   :  { %s1789_s10 = scalar_lea.vmem %s32_s25, 1024  ;;  %p1794_p4 = scmp.lt.s32.totalorder %s32_s25, %s32_s25 }
   0xb   :  { %p1790_p3 = scmp.ne.s32.totalorder %s32_s25, %s1789_s10  ;;  %p1795_p5 = scmp.lt.s32.totalorder %s1789_s10, %s1789_s10 }
   0xd   :  { %p1796_p6 = por %p1795_p5, %p1794_p4 }
   0xf   :  { %p1797_p7 = pnand %p1796_p6, %p1790_p3 }
  0x11   :  { %1800 = shalt.err (!%p1797_p7)
}
  0x12   :  { %s1898_s11 = smov 256   ;;  %s1899_s12 = smov 16  }
  0x13   :  { %37 = dma.hbm_to_vmem [thread:$0]  %s2045_s1, 1024, %s32_s25, [#allocation6], %s1898_s11, %s1898_s11, %s1899_s12  }
  0x14   :  { %s1900_s15 = smov [#allocation2]   ;;  %s1901_s17 = smov [#allocation7]  }
  0x15   :  { %s22_s16 = sshll.u32 %s1900_s15, 4  ;;  %s45_s18 = sshll.u32 %s1901_s17, 4  ;;  %s23_s16 = int_to_ptr.vmem [resolvable:$true] %s22_s16  ;;  %s46_s18 = int_to_ptr.vmem [resolvable:$true] %s45_s18 }
  0x16   :  { %s1801_s21 = scalar_lea.hbm %s2044_s0, 128 }
  0x17   :  { %p1802_p8 = scmp.ne.s32.totalorder %s2044_s0, %s1801_s21  ;;  %p1805_p9 = scmp.lt.u32.totalorder %s1801_s21, %s2044_s0 }
  0x19   :  { %p1807_p10 = pnand %p1805_p9, %p1802_p8 }
  0x1b   :  { %1810 = shalt.err (!%p1807_p10)
}
  0x1c   :  { %s1811_s1 = scalar_lea.vmem %s23_s16, 128  ;;  %p1816_p12 = scmp.lt.s32.totalorder %s23_s16, %s23_s16 }
  0x1d   :  { %p1812_p11 = scmp.ne.s32.totalorder %s23_s16, %s1811_s1  ;;  %p1817_p13 = scmp.lt.s32.totalorder %s1811_s1, %s1811_s1 }
  0x1f   :  { %p1818_p0 = por %p1817_p13, %p1816_p12 }
  0x21   :  { %p1819_p1 = pnand %p1818_p0, %p1812_p11 }
  0x23   :  { %1822 = shalt.err (!%p1819_p1)
}
  0x24   :  { %25 = dma.hbm_to_vmem [thread:$0]  %s2044_s0, 128, %s23_s16, [#allocation3]  }
  0x25   :  { %s1823_s30 = scalar_lea.hbm %s2047_s3, 12288 }
  0x26   :  { %p1824_p2 = scmp.ne.s32.totalorder %s2047_s3, %s1823_s30  ;;  %p1827_p3 = scmp.lt.u32.totalorder %s1823_s30, %s2047_s3 }
  0x28   :  { %p1829_p4 = pnand %p1827_p3, %p1824_p2 }
  0x2a   :  { %1832 = shalt.err (!%p1829_p4)
}
  0x2b   :  { %s1833_s12 = scalar_lea.vmem %s46_s18, 12288  ;;  %p1838_p6 = scmp.lt.s32.totalorder %s46_s18, %s46_s18 }
  0x2c   :  { %p1834_p5 = scmp.ne.s32.totalorder %s46_s18, %s1833_s12  ;;  %p1839_p7 = scmp.lt.s32.totalorder %s1833_s12, %s1833_s12 }
  0x2e   :  { %p1840_p8 = por %p1839_p7, %p1838_p6 }
  0x30   :  { %p1841_p9 = pnand %p1840_p8, %p1834_p5 }
  0x32   :  { %1844 = shalt.err (!%p1841_p9)
}
  0x33   :  { %s1902_s0 = smov 192   ;;  %s1903_s13 = smov 12  }
  0x34   :  { %51 = dma.hbm_to_vmem [thread:$0]  %s2047_s3, 12288, %s46_s18, [#allocation6], %s1902_s0, %s1902_s0, %s1903_s13  }
  0x35   :  { %s1904_s16 = smov [#allocation8]   ;;  %s1845_s21 = scalar_lea.hbm %s2049_s5, 3072 }
  0x36   :  { %s59_s17 = sshll.u32 %s1904_s16, 4  ;;  %p1846_p10 = scmp.ne.s32.totalorder %s2049_s5, %s1845_s21  ;;  %s60_s17 = int_to_ptr.vmem [resolvable:$true] %s59_s17 }
  0x37   :  { %p1849_p11 = scmp.lt.u32.totalorder %s1845_s21, %s2049_s5 }
  0x39   :  { %p1851_p12 = pnand %p1849_p11, %p1846_p10 }
  0x3b   :  { %1854 = shalt.err (!%p1851_p12)
}
  0x3c   :  { %s1855_s1 = scalar_lea.vmem %s60_s17, 3072  ;;  %p1860_p0 = scmp.lt.s32.totalorder %s60_s17, %s60_s17 }
  0x3d   :  { %p1856_p13 = scmp.ne.s32.totalorder %s60_s17, %s1855_s1  ;;  %p1861_p1 = scmp.lt.s32.totalorder %s1855_s1, %s1855_s1 }
  0x3f   :  { %p1862_p2 = por %p1861_p1, %p1860_p0 }
  0x41   :  { %p1863_p3 = pnand %p1862_p2, %p1856_p13 }
  0x43   :  { %1866 = shalt.err (!%p1863_p3)
}
  0x44   :  { %s1905_s3 = smov 64   ;;  %s1906_s18 = smov 4  }
  0x45   :  { %65 = dma.hbm_to_vmem [thread:$0]  %s2049_s5, 3072, %s60_s17, [#allocation9], %s1905_s3, %s1905_s3, %s1906_s18  }
  0x46   :  { %1889 = dma.done.wait [#allocation3], 128  }
  0x47   :  { %1890 = vsyncadd [#allocation3], 4294967168 }
  0x48   :  { %1891 = dma.done.wait [#allocation6], 13312  }
  0x49   :  { %1892 = vsyncadd [#allocation6], 4294953984 }
  0x4a   :  { %1893 = dma.done.wait [#allocation9], 3072  }
  0x4b   :  { %1894 = vsyncadd [#allocation9], 4294964224  ;;  %v1907_v0 = vmov 0   ;;  %v1615_v1 = vld [vmem:[#allocation5 + $0x4] ss:$16 sps:$4 sm:$0xff]   ;;  %v81_v5 = vld [vmem:[#allocation2] sm:$0xff]  ;;  %v93_v61 = vlaneseq }
  0x4c   :  { %189 = vmatprep.mubr.bf16.mxu0 %v1907_v0  ;;  %230 = vmatprep.mubr.bf16.mxu1 %v1907_v0  ;;  %v1617_v2 = vld [vmem:[#allocation5] ss:$16 sps:$4 sm:$0xff]   ;;  %v1618_v3 = vld [vmem:[#allocation5 + $0x24] ss:$16 sps:$4 sm:$0xff]   ;;  %v1621_v6 = vld [vmem:[#allocation5 + $0xc] ss:$16 sps:$4 sm:$0xff]   ;;  %v82_v9 = vpack.c.bf16 %v81_v5, %v81_v5 }
  0x4d   :  { %157 = vmatprep.subr.bf16.mxu0 %v1615_v1  ;;  %v1620_v4 = vld [vmem:[#allocation5 + $0x20] ss:$16 sps:$4 sm:$0xff]   ;;  %v1623_v7 = vld [vmem:[#allocation5 + $0x8] ss:$16 sps:$4 sm:$0xff]   ;;  %198 = vmatprep.subr.bf16.mxu1 %v1621_v6  ;;  %v1624_v8 = vld [vmem:[#allocation5 + $0x2c] ss:$16 sps:$4 sm:$0xff]  }
  0x4e   :  { %158 = vmatpush1.bf16.msra.mxu0 %v1617_v2  ;;  %199 = vmatpush1.bf16.msra.mxu1 %v1623_v7  ;;  %v1626_v10 = vld [vmem:[#allocation5 + $0x28] ss:$16 sps:$4 sm:$0xff]   ;;  %v1629_v11 = vld [vmem:[#allocation7 + $0x4] ss:$12 sps:$4 sm:$0xff]   ;;  %vm153_vm0 = vcmask 261120   ;;  %v1999_v62 = vshrl.u32 %v93_v61, 7 }
  0x4f   :  { %159 = vmatprep.subr.bf16.mxu0 %v1618_v3  ;;  %200 = vmatprep.subr.bf16.mxu1 %v1624_v8  ;;  %v1627_v12 = vld [vmem:[#allocation7] ss:$12 sps:$4 sm:$0xff]   ;;  %v1632_v13 = vld [vmem:[#allocation7 + $0x1c] ss:$12 sps:$4 sm:$0xff]   ;;  %v1630_v14 = vld [vmem:[#allocation7 + $0x18] ss:$12 sps:$4 sm:$0xff]  }
  0x50   :  { %v1635_v15 = vld [vmem:[#allocation7 + $0x34] ss:$12 sps:$4 sm:$0xff]   ;;  %v1633_v16 = vld [vmem:[#allocation7 + $0x30] ss:$12 sps:$4 sm:$0xff]   ;;  %v1638_v17 = vld [vmem:[#allocation7 + $0x4c] ss:$12 sps:$4 sm:$0xff]  }
  0x51   :  { %v1636_v18 = vld [vmem:[#allocation7 + $0x48] ss:$12 sps:$4 sm:$0xff]   ;;  %v1641_v21 = vld [vmem:[#allocation7 + $0x64] ss:$12 sps:$4 sm:$0xff]   ;;  %v1659_v22 = vld [vmem:[#allocation7 + $0xe0] ss:$12 sps:$4 sm:$0xff]  }
  0x52   :  { %160 = vmatpush1.bf16.msra.mxu0 %v1620_v4  ;;  %201 = vmatpush1.bf16.msra.mxu1 %v1626_v10  ;;  %v1654_v19 = vld [vmem:[#allocation7 + $0xc8] ss:$12 sps:$4 sm:$0xff]   ;;  %v1660_v23 = vld [vmem:[#allocation7 + $0x20] ss:$12 sps:$4 sm:$0xff]   ;;  %v1664_v26 = vld [vmem:[#allocation7 + $0xf8] ss:$12 sps:$4 sm:$0xff]  }
  0x53   :  { %904 = vmatprep.subr.bf16.mxu0 %v1629_v11  ;;  %v1655_v20 = vld [vmem:[#allocation7 + $0x8] ss:$12 sps:$4 sm:$0xff]   ;;  %1500 = vmatprep.subr.bf16.mxu1 %v1654_v19  ;;  %v1639_v24 = vld [vmem:[#allocation7 + $0x60] ss:$12 sps:$4 sm:$0xff]   ;;  %v1665_v27 = vld [vmem:[#allocation7 + $0x38] ss:$12 sps:$4 sm:$0xff]  }
  0x54   :  { %v1644_v25 = vld [vmem:[#allocation7 + $0x7c] ss:$12 sps:$4 sm:$0xff]   ;;  %v1642_v28 = vld [vmem:[#allocation7 + $0x78] ss:$12 sps:$4 sm:$0xff]   ;;  %v1647_v29 = vld [vmem:[#allocation7 + $0x94] ss:$12 sps:$4 sm:$0xff]  }
  0x55   :  { %1377 = vmatmul.mubr.msk.bf16.vlgmr.msra.gmra.mrb[0].mxu0 %vm153_vm0, %v82_v9  ;;  %1378 = vmatmul.mubr.msk.bf16.vlgmr.msra.gmra.mrb[0].mxu1 %vm153_vm0, %v82_v9  ;;  %v1669_v30 = vld [vmem:[#allocation7 + $0x110] ss:$12 sps:$4 sm:$0xff]   ;;  %v1674_v33 = vld [vmem:[#allocation7 + $0x128] ss:$12 sps:$4 sm:$0xff]   ;;  %v1650_v34 = vld [vmem:[#allocation7 + $0xac] ss:$12 sps:$4 sm:$0xff]  }
  0x56   :  { %905 = vmatpush1.bf16.msra.mxu0 %v1627_v12  ;;  %1501 = vmatpush3.bf16.msra.mxu1 %v1655_v20  ;;  %v1670_v31 = vld [vmem:[#allocation7 + $0x50] ss:$12 sps:$4 sm:$0xff]   ;;  %v1675_v35 = vld [vmem:[#allocation7 + $0x68] ss:$12 sps:$4 sm:$0xff]   ;;  %v1679_v37 = vld [vmem:[#allocation7 + $0x140] ss:$12 sps:$4 sm:$0xff]  }
  0x57   :  { %906 = vmatprep.subr.bf16.mxu0 %v1632_v13  ;;  %1502 = vmatprep.subr.bf16.mxu1 %v1659_v22  ;;  %v1645_v32 = vld [vmem:[#allocation7 + $0x90] ss:$12 sps:$4 sm:$0xff]   ;;  %v1648_v36 = vld [vmem:[#allocation7 + $0xa8] ss:$12 sps:$4 sm:$0xff]   ;;  %v1680_v39 = vld [vmem:[#allocation7 + $0x80] ss:$12 sps:$4 sm:$0xff]  }
  0x58   :  { %v1653_v38 = vld [vmem:[#allocation7 + $0xc4] ss:$12 sps:$4 sm:$0xff]   ;;  %v1651_v40 = vld [vmem:[#allocation7 + $0xc0] ss:$12 sps:$4 sm:$0xff]   ;;  %v1658_v41 = vld [vmem:[#allocation7 + $0xdc] ss:$12 sps:$4 sm:$0xff]  }
  0x59   :  { %v1656_v42 = vld [vmem:[#allocation7 + $0xd8] ss:$12 sps:$4 sm:$0xff]   ;;  %v1663_v43 = vld [vmem:[#allocation7 + $0xf4] ss:$12 sps:$4 sm:$0xff]   ;;  %v1661_v44 = vld [vmem:[#allocation7 + $0xf0] ss:$12 sps:$4 sm:$0xff]  }
  0x5a   :  { %907 = vmatpush1.bf16.msra.mxu0 %v1630_v14  ;;  %1503 = vmatpush3.bf16.msra.mxu1 %v1660_v23  ;;  %v1668_v45 = vld [vmem:[#allocation7 + $0x10c] ss:$12 sps:$4 sm:$0xff]   ;;  %v1666_v46 = vld [vmem:[#allocation7 + $0x108] ss:$12 sps:$4 sm:$0xff]   ;;  %v1673_v47 = vld [vmem:[#allocation7 + $0x124] ss:$12 sps:$4 sm:$0xff]  }
  0x5b   :  { %908 = vmatprep.subr.bf16.mxu0 %v1635_v15  ;;  %1504 = vmatprep.subr.bf16.mxu1 %v1664_v26  ;;  %v1671_v48 = vld [vmem:[#allocation7 + $0x120] ss:$12 sps:$4 sm:$0xff]   ;;  %v1678_v49 = vld [vmem:[#allocation7 + $0x13c] ss:$12 sps:$4 sm:$0xff]   ;;  %v1676_v50 = vld [vmem:[#allocation7 + $0x138] ss:$12 sps:$4 sm:$0xff]  }
  0x5c   :  { %v1683_v51 = vld [vmem:[#allocation7 + $0x154] ss:$12 sps:$4 sm:$0xff]   ;;  %v1684_v52 = vld [vmem:[#allocation7 + $0x158] ss:$12 sps:$4 sm:$0xff]   ;;  %v1681_v53 = vld [vmem:[#allocation7 + $0x150] ss:$12 sps:$4 sm:$0xff]  }
  0x5d   :  { %v1685_v54 = vld [vmem:[#allocation7 + $0x98] ss:$12 sps:$4 sm:$0xff]   ;;  %v1689_v56 = vld [vmem:[#allocation7 + $0x170] ss:$12 sps:$4 sm:$0xff]   ;;  %v1686_v57 = vld [vmem:[#allocation7 + $0x168] ss:$12 sps:$4 sm:$0xff]  }
  0x5e   :  { %909 = vmatpush1.bf16.msra.mxu0 %v1633_v16  ;;  %1505 = vmatpush3.bf16.msra.mxu1 %v1665_v27  ;;  %v1688_v55 = vld [vmem:[#allocation7 + $0x16c] ss:$12 sps:$4 sm:$0xff]   ;;  %v1690_v58 = vld [vmem:[#allocation7 + $0xb0] ss:$12 sps:$4 sm:$0xff]   ;;  %v1694_v60 = vld [vmem:[#allocation7 + $0x248] ss:$12 sps:$4 sm:$0xff]  }
  0x5f   :  { %910 = vmatprep.subr.bf16.mxu0 %v1638_v17  ;;  %1506 = vmatprep.subr.bf16.mxu1 %v1669_v30  ;;  %v1693_v59 = vld [vmem:[#allocation7 + $0x184] ss:$12 sps:$4 sm:$0xff]   ;;  %v95_v63 = vsub.s32 0, %v1999_v62  ;;  %v2005_v0 = vld [vmem:[%s2046_s2] sm:$0xf]  ;;  %v99_v1 = vsub.s32 1, %v1999_v62 }
  0x60   :  { %v107_v3 = vsub.s32 3, %v1999_v62  ;;  %v1691_v19 = vld [vmem:[#allocation7 + $0x180] ss:$12 sps:$4 sm:$0xff]   ;;  %v1695_v20 = vld [vmem:[#allocation7 + $0x188] ss:$12 sps:$4 sm:$0xff]   ;;  %vm1909_vm1 = vmmov 0  }
  0x61   :  { %v96_v2 = vrot.slane %v2005_v0, %v95_v63  ;;  %v100_v4 = vrot.slane %v2005_v0, %v99_v1  ;;  %v1698_v23 = vld [vmem:[#allocation7 + $0x19c] ss:$12 sps:$4 sm:$0xff]   ;;  %v1696_v27 = vld [vmem:[#allocation7 + $0x198] ss:$12 sps:$4 sm:$0xff]   ;;  %s1910_s8 = smov [#allocation10]  }
  0x62   :  { %911 = vmatpush1.bf16.msra.mxu0 %v1636_v18  ;;  %1507 = vmatpush3.bf16.msra.mxu1 %v1670_v31  ;;  %v108_v8 = vrot.slane %v2005_v0, %v107_v3  ;;  %v1704_v30 = vld [vmem:[#allocation7 + $0x278] ss:$12 sps:$4 sm:$0xff]   ;;  %v1701_v31 = vld [vmem:[#allocation7 + $0x1b0] ss:$12 sps:$4 sm:$0xff]   ;;  %s1358_s9 = sshll.u32 %s1910_s8, 4  ;;  %s1359_s9 = int_to_ptr.vmem [resolvable:$true] %s1358_s9 }
  0x63   :  { %912 = vmatprep.subr.bf16.mxu0 %v1641_v21  ;;  %1508 = vmatprep.subr.bf16.mxu1 %v1674_v33  ;;  %v1708_v33 = vld [vmem:[#allocation7 + $0x1cc] ss:$12 sps:$4 sm:$0xff]   ;;  %s1867_s10 = scalar_lea.vmem %s1359_s9, 128  ;;  %p1872_p5 = scmp.lt.s32.totalorder %s1359_s9, %s1359_s9 }
  0x64   :  { %v1734_v61 = vld [vmem:[#allocation7 + $0x258] ss:$12 sps:$4 sm:$0xff]   ;;  %p1868_p4 = scmp.ne.s32.totalorder %s1359_s9, %s1867_s10  ;;  %p1873_p6 = scmp.lt.s32.totalorder %s1867_s10, %s1867_s10 }
  0x65   :  { %v1742_v3 = vld [vmem:[#allocation7 + $0x28c] ss:$12 sps:$4 sm:$0xff]  }
  0x66   :  { %913 = vmatpush1.bf16.msra.mxu0 %v1639_v24  ;;  %1509 = vmatpush3.bf16.msra.mxu1 %v1675_v35  ;;  %v1699_v24 = vld [vmem:[#allocation7 + $0x260] ss:$12 sps:$4 sm:$0xff]   ;;  %v1706_v35 = vld [vmem:[#allocation7 + $0x1c8] ss:$12 sps:$4 sm:$0xff]   ;;  %p1874_p7 = por %p1873_p6, %p1872_p5 }
  0x67   :  { %914 = vmatprep.subr.bf16.mxu0 %v1644_v25  ;;  %1510 = vmatprep.subr.bf16.mxu1 %v1679_v37  ;;  %v1713_v37 = vld [vmem:[#allocation7 + $0x1e4] ss:$12 sps:$4 sm:$0xff]  }
  0x68   :  { %p1875_p8 = pnand %p1874_p7, %p1868_p4 }
  0x6a   :  { %915 = vmatpush1.bf16.msra.mxu0 %v1642_v28  ;;  %1511 = vmatpush3.bf16.msra.mxu1 %v1680_v39  ;;  %v1700_v28 = vld [vmem:[#allocation7 + $0x1a0] ss:$12 sps:$4 sm:$0xff]   ;;  %v103_v39 = vsub.s32 2, %v1999_v62  ;;  %v1773_v62 = vld [vmem:[#allocation8 + $0x90] sm:$0xff]  }
  0x6b   :  { %916 = vmatprep.subr.bf16.mxu0 %v1647_v29  ;;  %1512 = vmatprep.subr.bf16.mxu1 %v1684_v52  ;;  %v1703_v29 = vld [vmem:[#allocation7 + $0x1b4] ss:$12 sps:$4 sm:$0xff]   ;;  %v1728_v52 = vld [vmem:[#allocation7 + $0x22c] ss:$12 sps:$4 sm:$0xff]  }
  0x6e   :  { %917 = vmatpush1.bf16.msra.mxu0 %v1645_v32  ;;  %1513 = vmatpush3.bf16.msra.mxu1 %v1685_v54  ;;  %v1705_v32 = vld [vmem:[#allocation7 + $0x1b8] ss:$12 sps:$4 sm:$0xff]  }
  0x6f   :  { %918 = vmatprep.subr.bf16.mxu0 %v1650_v34  ;;  %1514 = vmatprep.subr.bf16.mxu1 %v1689_v56  ;;  %v1709_v34 = vld [vmem:[#allocation7 + $0x290] ss:$12 sps:$4 sm:$0xff]  }
  0x70   :  { %v1730_v56 = vld [vmem:[#allocation7 + $0x230] ss:$12 sps:$4 sm:$0xff]  }
  0x72   :  { %919 = vmatpush1.bf16.msra.mxu0 %v1648_v36  ;;  %1515 = vmatpush3.bf16.msra.mxu1 %v1690_v58  ;;  %v1710_v36 = vld [vmem:[#allocation7 + $0x1d0] ss:$12 sps:$4 sm:$0xff]  }
  0x73   :  { %920 = vmatprep.subr.bf16.mxu0 %v1653_v38  ;;  %1522 = vmatprep.subr.bf16.mxu1 %v1694_v60  ;;  %v1714_v38 = vld [vmem:[#allocation7 + $0x2a8] ss:$12 sps:$4 sm:$0xff]  }
  0x74   :  { %v1736_v60 = vld [vmem:[#allocation7 + $0x25c] ss:$12 sps:$4 sm:$0xff]  }
  0x76   :  { %921 = vmatpush1.bf16.msra.mxu0 %v1651_v40  ;;  %v1711_v40 = vld [vmem:[#allocation7 + $0x1e0] ss:$12 sps:$4 sm:$0xff]  }
  0x77   :  { %922 = vmatprep.subr.bf16.mxu0 %v1658_v41  ;;  %v1715_v41 = vld [vmem:[#allocation7 + $0x1e8] ss:$12 sps:$4 sm:$0xff]  }
  0x7a   :  { %923 = vmatpush1.bf16.msra.mxu0 %v1656_v42  ;;  %v1718_v42 = vld [vmem:[#allocation7 + $0x1fc] ss:$12 sps:$4 sm:$0xff]  }
  0x7b   :  { %924 = vmatprep.subr.bf16.mxu0 %v1663_v43  ;;  %v1719_v43 = vld [vmem:[#allocation7 + $0x2c0] ss:$12 sps:$4 sm:$0xff]  }
  0x7e   :  { %925 = vmatpush1.bf16.msra.mxu0 %v1661_v44  ;;  %v104_v44 = vrot.slane %v2005_v0, %v103_v39  ;;  %v1739_v0 = vld [vmem:[#allocation7 + $0x274] ss:$12 sps:$4 sm:$0xff]  }
  0x7f   :  { %926 = vmatprep.subr.bf16.mxu0 %v1668_v45  ;;  %v1716_v45 = vld [vmem:[#allocation7 + $0x1f8] ss:$12 sps:$4 sm:$0xff]  }
  0x82   :  { %927 = vmatpush1.bf16.msra.mxu0 %v1666_v46  ;;  %v1720_v46 = vld [vmem:[#allocation7 + $0x200] ss:$12 sps:$4 sm:$0xff]  }
  0x83   :  { %928 = vmatprep.subr.bf16.mxu0 %v1673_v47  ;;  %v1723_v47 = vld [vmem:[#allocation7 + $0x214] ss:$12 sps:$4 sm:$0xff]  }
  0x86   :  { %929 = vmatpush1.bf16.msra.mxu0 %v1671_v48  ;;  %v1724_v48 = vld [vmem:[#allocation7 + $0x2d8] ss:$12 sps:$4 sm:$0xff]  }
  0x87   :  { %930 = vmatprep.subr.bf16.mxu0 %v1678_v49 }
  0x8a   :  { %931 = vmatpush1.bf16.msra.mxu0 %v1676_v50  ;;  %v1721_v50 = vld [vmem:[#allocation7 + $0x210] ss:$12 sps:$4 sm:$0xff]  }
  0x8b   :  { %932 = vmatprep.subr.bf16.mxu0 %v1683_v51  ;;  %v1725_v51 = vld [vmem:[#allocation7 + $0x218] ss:$12 sps:$4 sm:$0xff]  }
  0x8e   :  { %933 = vmatpush1.bf16.msra.mxu0 %v1681_v53  ;;  %v1729_v53 = vld [vmem:[#allocation7 + $0x2f0] ss:$12 sps:$4 sm:$0xff]  }
  0x8f   :  { %934 = vmatprep.subr.bf16.mxu0 %v1688_v55  ;;  %v1726_v55 = vld [vmem:[#allocation7 + $0x228] ss:$12 sps:$4 sm:$0xff]  }
  0x92   :  { %935 = vmatpush1.bf16.msra.mxu0 %v1686_v57  ;;  %v1733_v57 = vld [vmem:[#allocation7 + $0x244] ss:$12 sps:$4 sm:$0xff]  }
  0x93   :  { %945 = vmatprep.subr.bf16.mxu0 %v1693_v59  ;;  %v1731_v59 = vld [vmem:[#allocation7 + $0x240] ss:$12 sps:$4 sm:$0xff]  }
 0x128   :  { %v191_v5 = vpop.f32.mrb[0].mxu0  ;;  %v232_v13 = vpop.f32.mrb[0].mxu1 }
 0x129   :  { %v192_v6 = vadd.f32 %v191_v5, %v96_v2  ;;  %v193_v7 = vpop.f32.mrb[1].mxu0  ;;  %v234_v15 = vpop.f32.mrb[1].mxu1  ;;  %v233_v49 = vadd.f32 %v232_v13, %v104_v44  ;;  %v1737_v2 = vld [vmem:[#allocation7 + $0x270] ss:$12 sps:$4 sm:$0xff]   ;;  %v1755_v13 = vld [vmem:[#allocation8 + $0x40] sm:$0xff]  }
 0x12a   :  { %v194_v9 = vadd.f32 %v193_v7, %v100_v4  ;;  %v195_v10 = vpop.f32.mrb[2].mxu0  ;;  %v235_v16 = vadd.f32 %v234_v15, %v108_v8  ;;  %v236_v17 = vpop.f32.mrb[2].mxu1  ;;  %v1740_v4 = vld [vmem:[#allocation7 + $0x288] ss:$12 sps:$4 sm:$0xff]   ;;  %v1745_v5 = vld [vmem:[#allocation7 + $0x2a4] ss:$12 sps:$4 sm:$0xff]  }
 0x12b   :  { %v239_v11 = vmax.f32 %v192_v6, 0.0  ;;  %v196_v12 = vpop.f32.mrb[3].mxu0  ;;  %v237_v21 = vpop.f32.mrb[3].mxu1  ;;  %v241_v54 = vmax.f32 %v233_v49, 0.0  ;;  %v1743_v6 = vld [vmem:[#allocation7 + $0x2a0] ss:$12 sps:$4 sm:$0xff]  }
 0x12c   :  { %v240_v14 = vmax.f32 %v194_v9, 0.0  ;;  %v242_v25 = vmax.f32 %v235_v16, 0.0  ;;  %v1748_v7 = vld [vmem:[#allocation7 + $0x2bc] ss:$12 sps:$4 sm:$0xff]   ;;  %v1746_v8 = vld [vmem:[#allocation7 + $0x2b8] ss:$12 sps:$4 sm:$0xff]  }
 0x12d   :  { %v243_v22 = vpack.c.bf16 %v239_v11, %v239_v11  ;;  %v245_v58 = vpack.c.bf16 %v241_v54, %v241_v54  ;;  %v1751_v9 = vld [vmem:[#allocation7 + $0x2d4] ss:$12 sps:$4 sm:$0xff]   ;;  %v1749_v10 = vld [vmem:[#allocation7 + $0x2d0] ss:$12 sps:$4 sm:$0xff]   ;;  %v1754_v11 = vld [vmem:[#allocation7 + $0x2ec] ss:$12 sps:$4 sm:$0xff]  }
 0x12e   :  { %v244_v18 = vpack.c.bf16 %v240_v14, %v240_v14  ;;  %v246_v26 = vpack.c.bf16 %v242_v25, %v242_v25  ;;  %v1752_v12 = vld [vmem:[#allocation7 + $0x2e8] ss:$12 sps:$4 sm:$0xff]   ;;  %v1756_v14 = vld [vmem:[#allocation8] sm:$0xff]  }
 0x12f   :  { %v1757_v15 = vld [vmem:[#allocation8 + $0x48] sm:$0xff]   ;;  %v1759_v17 = vld [vmem:[#allocation8 + $0x50] sm:$0xff]   ;;  %v1763_v21 = vld [vmem:[#allocation8 + $0x60] sm:$0xff]  }
 0x130   :  { %936 = vmatprep.mubr.bf16.mxu0 %v244_v18  ;;  %1018 = vmatprep.mubr.bf16.mxu1 %v244_v18  ;;  %v1758_v16 = vld [vmem:[#allocation8 + $0x8] sm:$0xff]   ;;  %v1760_v18 = vld [vmem:[#allocation8 + $0x10] sm:$0xff]  }
 0x131   :  { %937 = vmatmul.mubr.bf16.vlgmr.msra.gmra.mrb[4].mxu0 %v243_v22  ;;  %1019 = vmatmul.mubr.bf16.vlgmr.msra.gmra.mrb[4].mxu1 %v243_v22  ;;  %v1764_v22 = vld [vmem:[#allocation8 + $0x20] sm:$0xff]   ;;  %v1767_v25 = vld [vmem:[#allocation8 + $0x70] sm:$0xff]  }
 0x132   :  { %946 = vmatpush1.bf16.msra.mxu0 %v1691_v19  ;;  %1523 = vmatpush3.bf16.msra.mxu1 %v1695_v20  ;;  %v1761_v19 = vld [vmem:[#allocation8 + $0x58] sm:$0xff]  }
 0x133   :  { %947 = vmatprep.subr.bf16.mxu0 %v1698_v23  ;;  %1524 = vmatprep.subr.bf16.mxu1 %v1699_v24  ;;  %v1762_v20 = vld [vmem:[#allocation8 + $0x18] sm:$0xff]   ;;  %v1765_v23 = vld [vmem:[#allocation8 + $0x68] sm:$0xff]  }
 0x134   :  { %1058 = vmatprep.mubr.bf16.mxu1 %v246_v26  ;;  %977 = vmatprep.mubr.bf16.mxu0 %v246_v26  ;;  %v1766_v24 = vld [vmem:[#allocation8 + $0x28] sm:$0xff]   ;;  %v1768_v26 = vld [vmem:[#allocation8 + $0x30] sm:$0xff]  }
 0x136   :  { %948 = vmatpush1.bf16.msra.mxu0 %v1696_v27  ;;  %1525 = vmatpush3.bf16.msra.mxu1 %v1700_v28  ;;  %v1769_v27 = vld [vmem:[#allocation8 + $0x78] sm:$0xff]  }
 0x137   :  { %949 = vmatprep.subr.bf16.mxu0 %v1703_v29  ;;  %1526 = vmatprep.subr.bf16.mxu1 %v1704_v30  ;;  %v1770_v28 = vld [vmem:[#allocation8 + $0x38] sm:$0xff]   ;;  %v1908_v29 = vmov 0.0  }
 0x13a   :  { %950 = vmatpush1.bf16.msra.mxu0 %v1701_v31  ;;  %1527 = vmatpush3.bf16.msra.mxu1 %v1705_v32 }
 0x13b   :  { %951 = vmatprep.subr.bf16.mxu0 %v1708_v33  ;;  %1528 = vmatprep.subr.bf16.mxu1 %v1709_v34 }
 0x13e   :  { %952 = vmatpush1.bf16.msra.mxu0 %v1706_v35  ;;  %1529 = vmatpush3.bf16.msra.mxu1 %v1710_v36  ;;  %v375_v35 = vld [vmem:[%s2048_s4] sm:$0x7] }
 0x13f   :  { %953 = vmatprep.subr.bf16.mxu0 %v1713_v37  ;;  %1530 = vmatprep.subr.bf16.mxu1 %v1714_v38  ;;  %v388_v36 = vrot.slane %v375_v35, %v103_v39 }
 0x142   :  { %954 = vmatpush1.bf16.msra.mxu0 %v1711_v40  ;;  %1531 = vmatpush3.bf16.msra.mxu1 %v1715_v41 }
 0x143   :  { %955 = vmatprep.subr.bf16.mxu0 %v1718_v42  ;;  %1532 = vmatprep.subr.bf16.mxu1 %v1719_v43 }
 0x146   :  { %956 = vmatpush1.bf16.msra.mxu0 %v1716_v45  ;;  %1533 = vmatpush3.bf16.msra.mxu1 %v1720_v46  ;;  %v380_v45 = vrot.slane %v375_v35, %v95_v63  ;;  %v384_v46 = vrot.slane %v375_v35, %v99_v1  ;;  %v1774_v63 = vld [vmem:[#allocation8 + $0x98] sm:$0xff]   ;;  %v1775_v1 = vld [vmem:[#allocation8 + $0xa0] sm:$0xff]  }
 0x147   :  { %957 = vmatprep.subr.bf16.mxu0 %v1723_v47  ;;  %1534 = vmatprep.subr.bf16.mxu1 %v1724_v48 }
 0x14a   :  { %958 = vmatpush1.bf16.msra.mxu0 %v1721_v50  ;;  %1535 = vmatpush3.bf16.msra.mxu1 %v1725_v51 }
 0x14b   :  { %959 = vmatprep.subr.bf16.mxu0 %v1728_v52  ;;  %1536 = vmatprep.subr.bf16.mxu1 %v1729_v53 }
 0x14e   :  { %960 = vmatpush1.bf16.msra.mxu0 %v1726_v55  ;;  %1537 = vmatpush3.bf16.msra.mxu1 %v1730_v56  ;;  %v1771_v55 = vld [vmem:[#allocation8 + $0x80] sm:$0xff]  }
 0x14f   :  { %961 = vmatprep.subr.bf16.mxu0 %v1733_v57  ;;  %1544 = vmatprep.subr.bf16.mxu1 %v1755_v13  ;;  %v1772_v57 = vld [vmem:[#allocation8 + $0x88] sm:$0xff]  }
 0x151   :  { %1059 = vmatmul.mubr.bf16.vlgmr.msra.gmra.mrb[8].mxu1 %v245_v58 }
 0x152   :  { %962 = vmatpush1.bf16.msra.mxu0 %v1731_v59  ;;  %1545 = vmatpush3.bf16.msra.mxu1 %v1756_v14  ;;  %v1777_v59 = vld [vmem:[#allocation8 + $0xb0] sm:$0xff]  }
 0x153   :  { %963 = vmatprep.subr.bf16.mxu0 %v1736_v60  ;;  %1546 = vmatprep.subr.bf16.mxu1 %v1757_v15  ;;  %v1778_v60 = vld [vmem:[#allocation8 + $0xb8] sm:$0xff]  }
 0x156   :  { %964 = vmatpush1.bf16.msra.mxu0 %v1734_v61  ;;  %1547 = vmatpush3.bf16.msra.mxu1 %v1758_v16 }
 0x157   :  { %965 = vmatprep.subr.bf16.mxu0 %v1739_v0  ;;  %1548 = vmatprep.subr.bf16.mxu1 %v1759_v17 }
 0x15a   :  { %966 = vmatpush1.bf16.msra.mxu0 %v1737_v2  ;;  %1549 = vmatpush3.bf16.msra.mxu1 %v1760_v18 }
 0x15b   :  { %967 = vmatprep.subr.bf16.mxu0 %v1742_v3  ;;  %1550 = vmatprep.subr.bf16.mxu1 %v1761_v19 }
 0x15e   :  { %968 = vmatpush1.bf16.msra.mxu0 %v1740_v4  ;;  %1551 = vmatpush3.bf16.msra.mxu1 %v1762_v20 }
 0x15f   :  { %969 = vmatprep.subr.bf16.mxu0 %v1745_v5  ;;  %1552 = vmatprep.subr.bf16.mxu1 %v1763_v21 }
 0x162   :  { %970 = vmatpush1.bf16.msra.mxu0 %v1743_v6  ;;  %1553 = vmatpush3.bf16.msra.mxu1 %v1764_v22 }
 0x163   :  { %971 = vmatprep.subr.bf16.mxu0 %v1748_v7  ;;  %1554 = vmatprep.subr.bf16.mxu1 %v1765_v23  ;;  %v1475_v7 = vld [vmem:[%s2050_s6] ss:$0 sm:$0xff] }
 0x166   :  { %972 = vmatpush1.bf16.msra.mxu0 %v1746_v8  ;;  %1555 = vmatpush3.bf16.msra.mxu1 %v1766_v24 }
 0x167   :  { %973 = vmatprep.subr.bf16.mxu0 %v1751_v9  ;;  %1556 = vmatprep.subr.bf16.mxu1 %v1767_v25 }
 0x16a   :  { %974 = vmatpush1.bf16.msra.mxu0 %v1749_v10  ;;  %1557 = vmatpush3.bf16.msra.mxu1 %v1768_v26 }
 0x16b   :  { %975 = vmatprep.subr.bf16.mxu0 %v1754_v11  ;;  %1558 = vmatprep.subr.bf16.mxu1 %v1769_v27 }
 0x16e   :  { %976 = vmatpush1.bf16.msra.mxu0 %v1752_v12  ;;  %1559 = vmatpush3.bf16.msra.mxu1 %v1770_v28 }
 0x16f   :  { %1575 = vmatprep.subr.bf16.mxu1 %v1908_v29 }
 0x171   :  { %978 = vmatmul.mubr.bf16.vlgmr.msra.gmra.mrb[4].mxu0 %v245_v58  ;;  %v1776_v58 = vld [vmem:[#allocation8 + $0xa8] sm:$0xff]  }
 0x204   :  { %v1516_v30 = vpop.f32.mrb[4].mxu1 }
 0x205   :  { %v1517_v31 = vpop.f32.mrb[5].mxu1 }
 0x206   :  { %v1518_v32 = vadd.f32 %v1517_v31, %v1516_v30  ;;  %v1519_v33 = vpop.f32.mrb[6].mxu1 }
 0x207   :  { %v1520_v34 = vpop.f32.mrb[7].mxu1 }
 0x208   :  { %v1021_v40 = vadd.f32 %v1518_v32, %v388_v36 }
 0x224   :  { %v1538_v37 = vpop.f32.mrb[8].mxu1 }
 0x225   :  { %v1539_v38 = vpop.f32.mrb[9].mxu1 }
 0x226   :  { %v1540_v41 = vadd.f32 %v1539_v38, %v1538_v37  ;;  %v1541_v42 = vpop.f32.mrb[10].mxu1 }
 0x227   :  { %v1542_v43 = vpop.f32.mrb[11].mxu1 }
 0x228   :  { %v1061_v44 = vadd.f32 %v1540_v41, %v1021_v40 }
 0x22a   :  { %v1068_v61 = vmax.f32 %v1061_v44, 0.0 }
 0x22c   :  { %v1071_v0 = vpack.c.bf16 %v1068_v61, %v1068_v61 }
 0x244   :  { %v979_v47 = vpop.f32.mrb[4].mxu0 }
 0x245   :  { %v1595_v48 = vadd.f32 %v979_v47, %v380_v45  ;;  %v981_v49 = vpop.f32.mrb[5].mxu0 }
 0x246   :  { %v1596_v50 = vadd.f32 %v981_v49, %v384_v46  ;;  %v983_v51 = vpop.f32.mrb[6].mxu0 }
 0x247   :  { %v1066_v52 = vmax.f32 %v1595_v48, 0.0  ;;  %v984_v39 = vpop.f32.mrb[7].mxu0 }
 0x248   :  { %v1067_v53 = vmax.f32 %v1596_v50, 0.0 }
 0x249   :  { %v1069_v56 = vpack.c.bf16 %v1066_v52, %v1066_v52 }
 0x24a   :  { %v1070_v54 = vpack.c.bf16 %v1067_v53, %v1067_v53 }
 0x24c   :  { %1303 = vmatprep.mubr.bf16.mxu1 %v1070_v54 }
 0x24d   :  { %1304 = vmatmul.mubr.bf16.vlgmr.msra.gmra.mrb[12].mxu1 %v1069_v56 }
 0x24e   :  { %1576 = vmatpush3.bf16.msra.mxu1 %v1771_v55  ;;  %1591 = vmatprep.mubr.msk.bf16.mxu1 %vm1909_vm1, %v1908_v29 }
 0x24f   :  { %1577 = vmatprep.subr.bf16.mxu1 %v1908_v29 }
 0x252   :  { %1578 = vmatpush3.bf16.msra.mxu1 %v1772_v57 }
 0x253   :  { %1579 = vmatprep.subr.bf16.mxu1 %v1908_v29 }
 0x256   :  { %1580 = vmatpush3.bf16.msra.mxu1 %v1773_v62 }
 0x257   :  { %1581 = vmatprep.subr.bf16.mxu1 %v1908_v29 }
 0x25a   :  { %1582 = vmatpush3.bf16.msra.mxu1 %v1774_v63 }
 0x25b   :  { %1583 = vmatprep.subr.bf16.mxu1 %v1908_v29 }
 0x25e   :  { %1584 = vmatpush3.bf16.msra.mxu1 %v1775_v1 }
 0x25f   :  { %1585 = vmatprep.subr.bf16.mxu1 %v1908_v29 }
 0x262   :  { %1586 = vmatpush3.bf16.msra.mxu1 %v1776_v58 }
 0x263   :  { %1587 = vmatprep.subr.bf16.mxu1 %v1908_v29 }
 0x266   :  { %1588 = vmatpush3.bf16.msra.mxu1 %v1777_v59 }
 0x267   :  { %1589 = vmatprep.subr.bf16.mxu1 %v1908_v29 }
 0x26a   :  { %1590 = vmatpush3.bf16.msra.mxu1 %v1778_v60 }
 0x26d   :  { %1592 = vmatmul.mubr.bf16.vlgmr.msra.gmra.mrb[16].mxu1 %v1071_v0 }
 0x320   :  { %v1560_v2 = vpop.f32.mrb[12].mxu1 }
 0x321   :  { %v1561_v3 = vpop.f32.mrb[13].mxu1 }
 0x322   :  { %v1562_v4 = vadd.f32 %v1561_v3, %v1560_v2  ;;  %v1563_v5 = vpop.f32.mrb[14].mxu1 }
 0x323   :  { %v1564_v6 = vpop.f32.mrb[15].mxu1 }
 0x324   :  { %v1306_v8 = vadd.f32 %v1562_v4, %v1475_v7 }
 0x340   :  { %v1345_v9 = vpop.f32.mrb[16].mxu1 }
 0x341   :  { %v1346_v10 = vadd.f32 %v1345_v9, %v1306_v8  ;;  %v1593_v11 = vpop.f32.mrb[17].mxu1 }
 0x342   :  { %v1348_v12 = vpop.f32.mrb[18].mxu1 }
 0x343   :  { %1351 = vst [vmem:[#allocation10] sm:$0xff] %v1346_v10  ;;  %v1594_v13 = vpop.f32.mrb[19].mxu1 }
 0x344   :  { %1878 = shalt.err (!%p1875_p8)
}
 0x345   :  { %s1879_s6 = scalar_lea.hbm %s2051_s7, 128 }
 0x346   :  { %p1880_p9 = scmp.ne.s32.totalorder %s2051_s7, %s1879_s6  ;;  %p1883_p10 = scmp.lt.u32.totalorder %s1879_s6, %s2051_s7 }
 0x348   :  { %p1885_p11 = pnand %p1883_p10, %p1880_p9 }
 0x34a   :  { %1888 = shalt.err (!%p1885_p11)
}
 0x34b   :  { %1361 = dma.vmem_to_hbm [thread:$0]  %s1359_s9, 128, %s2051_s7, [#allocation4]  }
 0x34c   :  { %1895 = dma.done.wait [#allocation4], 128  }
 0x34d   :  { %1896 = vsyncadd [#allocation4], 4294967168 }
 0x34e   :  { %1365 = vsyncpa [#allocation3], 1 }
 0x34f   :  { %1366 = vsyncpa [#allocation6], 1 }
 0x350   :  { %1367 = vsyncpa [#allocation9], 1 }
 0x351   :  { %1368 = vsyncpa [#allocation4], 1 }

</bundles_post_ra>
